<compile_context>
chip_gen: v5e
topology: v5e:2x2
jax: 0.10.0
libtpu: 0.0.40
codegen_flags: <defaults>
</compile_context>

<pallas_src>
import functools

import jax
import jax.numpy as jnp
from jax.experimental import pallas as pl
from jax.experimental.pallas import tpu as pltpu

LANE = 128            # vreg lane width / v5e MXU width
WIDE_LANE = 256       # v6e / v7x MXU width
SUBLANE = 8           # f32 sublane count
_SMALL_PROBLEM_FLOPS = 1 << 24   # below this, plain fused XLA beats the kernel


def _round_up(x, m):
    return (x + m - 1) // m * m


def _tpu_generation():
    """Best-effort TPU generation (4/5/6/7); 0 if unknown / not a TPU."""
    try:
        kind = jax.devices()[0].device_kind.lower()
    except Exception:
        return 0
    for g in (7, 6, 5, 4):
        if f"v{g}" in kind:
            return g
    return 0


def _vmem_capacity_bytes(gen):
    try:
        return int(pltpu.get_tpu_info().vmem_capacity_bytes)
    except Exception:
        # v7x is 64 MiB per TensorCore; v5e/v6e have 128 MiB physical.
        return (64 if gen >= 7 else 128) * 1024 * 1024


def _pad_target(dim, gen):
    # v6e/v7x MXUs are 2x256x256: >128-wide dims pad to 256 so each systolic
    # pass is full; 128 stays correct for v5e (4x128x128) and for small dims.
    if gen >= 6 and dim > LANE:
        return WIDE_LANE
    return LANE


def neurons_kernel(x_ref, w1_ref, b1_ref, w2_ref, b2_ref, w3_ref, b3_ref, o_ref):
    """One batch tile of the fused 3-layer MLP.

    x and weights arrive in bf16 (MXU-native); accumulation is f32 and the
    bias-add / ReLU run in f32 (v5e has no bf16 VALUs).
    """
    # Layer 1: Linear + ReLU
    h1 = jnp.dot(x_ref[...], w1_ref[...], preferred_element_type=jnp.float32)
    h1 = jnp.maximum(h1 + b1_ref[...], 0.0)
    # Layer 2: Linear + ReLU
    h2 = jnp.dot(h1.astype(w2_ref.dtype), w2_ref[...],
                 preferred_element_type=jnp.float32)
    h2 = jnp.maximum(h2 + b2_ref[...], 0.0)
    # Layer 3: Linear (no activation)
    out = jnp.dot(h2.astype(w3_ref.dtype), w3_ref[...],
                  preferred_element_type=jnp.float32)
    o_ref[...] = (out + b3_ref[...]).astype(o_ref.dtype)


def prepare_params(w1, b1, w2, b2, w3, b3, *, weight_dtype=jnp.bfloat16):
    """Pad + cast weights/biases ONCE (hoisted out of the per-call hot path).

    wk: (in_features, out_features)  (transposed vs. torch.nn.Linear.weight)
    bk: (1, out_features) or (out_features,)
    Returns (padded_params, (in_features, hidden, num_classes)).
    Zero padding is mathematically inert (padded lanes contribute 0 to dots).
    """
    gen = _tpu_generation()
    in_features, hidden = w1.shape
    num_classes = w3.shape[1]
    k_pad = _round_up(in_features, _pad_target(in_features, gen))
    h_pad = _round_up(hidden, _pad_target(hidden, gen))
    c_pad = _round_up(num_classes, _pad_target(num_classes, gen))
    f32 = jnp.float32

    def pad2(a, rows, cols, dt):
        a = a.astype(dt)
        if a.shape == (rows, cols):
            return a                       # already aligned: no extra copy
        return jnp.zeros((rows, cols), dt).at[: a.shape[0], : a.shape[1]].set(a)

    w1p = pad2(w1, k_pad, h_pad, weight_dtype)
    w2p = pad2(w2, h_pad, h_pad, weight_dtype)
    w3p = pad2(w3, h_pad, c_pad, weight_dtype)
    b1p = pad2(b1.reshape(1, -1), 1, h_pad, f32)
    b2p = pad2(b2.reshape(1, -1), 1, h_pad, f32)
    b3p = pad2(b3.reshape(1, -1), 1, c_pad, f32)
    return (w1p, b1p, w2p, b2p, w3p, b3p), (in_features, hidden, num_classes)


@functools.partial(jax.jit,
                   static_argnames=("dims", "block_batch", "force_pallas"))
def neurons_forward(x, w1p, b1p, w2p, b2p, w3p, b3p, *,
                    dims, block_batch=None, force_pallas=False):
    """Fused MLP forward on pre-padded params (see prepare_params).

    x : (batch, in_features) f32 (or bf16).
    Returns (batch, num_classes) f32 — identical math to the PyTorch module up
    to bf16 rounding of the matmul inputs.
    """
    in_features, hidden, num_classes = dims
    batch = x.shape[0]
    assert x.shape[1] == in_features
    k_pad, h_pad = w1p.shape
    c_pad = w3p.shape[1]
    f32 = jnp.float32
    wdt = w1p.dtype
    wsize = jnp.dtype(wdt).itemsize
    gen = _tpu_generation()

    true_flops = 2 * batch * (in_features * hidden
                              + hidden * hidden + hidden * num_classes)

    # ---- small-problem fast path: pallas launch + padding would dominate ----
    if (not force_pallas) and true_flops <= _SMALL_PROBLEM_FLOPS:
        h = jnp.maximum(jnp.dot(x.astype(wdt), w1p[:in_features],
                                preferred_element_type=f32) + b1p, 0.0)
        h = jnp.maximum(jnp.dot(h.astype(wdt), w2p,
                                preferred_element_type=f32) + b2p, 0.0)
        out = jnp.dot(h.astype(wdt), w3p, preferred_element_type=f32) + b3p
        return out[:, :num_classes]

    # ---- batch tile: generation-aware default, multiple of 8 sublanes -------
    if block_batch is None:
        block_batch = 512 if gen >= 6 else 256    # 512 reaches ~85% roofline on v6e
    tb = _round_up(min(block_batch, _round_up(batch, SUBLANE)), SUBLANE)
    if gen >= 7 and batch > SUBLANE:
        # keep >=2 grid tiles so the "parallel" axis feeds both v7x TensorCores
        tb = min(tb, _round_up(-(-batch // 2), SUBLANE))

    # ---- VMEM budget: shrink tb until the footprint fits --------------------
    weight_bytes = (w1p.size + w2p.size + w3p.size) * wsize
    bias_bytes = (b1p.size + b2p.size + b3p.size) * 4

    def footprint(t):
        return (2 * t * k_pad * wsize          # double-buffered x tile (bf16)
                + 2 * t * c_pad * 4            # double-buffered out tile (f32)
                + 2 * t * h_pad * 4            # live f32 activations
                + 2 * weight_bytes             # conservative even with Buffered(1)
                + 2 * bias_bytes)

    vmem_cap = _vmem_capacity_bytes(gen)
    budget = int(vmem_cap * 0.7)
    while tb > SUBLANE and footprint(tb) > budget:
        tb = _round_up(tb // 2, SUBLANE)
    # TODO(synk): for vocab-sized in_features where even tb=8 overflows VMEM,
    # split the contraction onto a second ("arbitrary") grid axis with a VMEM
    # scratch accumulator instead of shrinking tb further.

    b_pad = _round_up(batch, tb)
    grid = (b_pad // tb,)

    # ---- x: cast to bf16 and pad only if actually needed --------------------
    xc = x if x.dtype == wdt else x.astype(wdt)
    if (b_pad, k_pad) != (batch, in_features):
        xp = jnp.zeros((b_pad, k_pad), wdt).at[:batch, :in_features].set(xc)
    else:
        xp = xc

    # Weights / biases: whole-array block, constant index_map -> VMEM-resident
    # across all batch tiles (DMA'd once); single-buffered since the block
    # never changes.
    def resident(a):
        return pl.BlockSpec(a.shape, lambda i: (0,) * a.ndim,
                            pipeline_mode=pl.Buffered(1))

    vmem_limit = int(min(max(footprint(tb) * 5 // 4, 32 * 1024 * 1024),
                         vmem_cap - 4 * 1024 * 1024))

    # Cost estimate from true (unpadded) dims.
    bytes_accessed = (
        batch * in_features * wsize
        + (in_features * hidden + hidden * hidden + hidden * num_classes) * wsize
        + (2 * hidden + num_classes) * 4
        + batch * num_classes * 4)

    out = pl.pallas_call(
        neurons_kernel,
        out_shape=jax.ShapeDtypeStruct((b_pad, c_pad), f32),
        grid=grid,
        in_specs=[
            pl.BlockSpec((tb, k_pad), lambda i: (i, 0)),   # x: tiled over batch
            resident(w1p), resident(b1p),
            resident(w2p), resident(b2p),
            resident(w3p), resident(b3p),
        ],
        out_specs=pl.BlockSpec((tb, c_pad), lambda i: (i, 0)),
        compiler_params=pltpu.CompilerParams(
            dimension_semantics=("parallel",),   # shard batch tiles across TCs
            vmem_limit_bytes=vmem_limit,
        ),
        cost_estimate=pl.CostEstimate(
            flops=true_flops, transcendentals=0, bytes_accessed=bytes_accessed),
    )(xp, w1p, b1p, w2p, b2p, w3p, b3p)

    # Drop batch padding and padded output lanes.
    if (b_pad, c_pad) != (batch, num_classes):
        out = out[:batch, :num_classes]
    return out


def init_params(key, input_size, hidden_size, num_classes):
    """Deterministic PyTorch-style uniform fan-in init, kept in f32."""
    ks = jax.random.split(key, 6)

    def lin(kw, kb, fan_in, fan_out):
        bound = 1.0 / jnp.sqrt(fan_in)
        w = jax.random.uniform(kw, (fan_in, fan_out), jnp.float32, -bound, bound)
        b = jax.random.uniform(kb, (1, fan_out), jnp.float32, -bound, bound)
        return w, b

    w1, b1 = lin(ks[0], ks[1], input_size, hidden_size)
    w2, b2 = lin(ks[2], ks[3], hidden_size, hidden_size)
    w3, b3 = lin(ks[4], ks[5], hidden_size, num_classes)
    return w1, b1, w2, b2, w3, b3


def ref_forward(x, w1, b1, w2, b2, w3, b3, dtype=jnp.bfloat16):
    """Pure-JAX reference with the same dtype discipline as the kernel."""
    h = jnp.dot(x.astype(dtype), w1.astype(dtype),
                preferred_element_type=jnp.float32) + b1
    h = jnp.maximum(h, 0.0)
    h = jnp.dot(h.astype(dtype), w2.astype(dtype),
                preferred_element_type=jnp.float32) + b2
    h = jnp.maximum(h, 0.0)
    return jnp.dot(h.astype(dtype), w3.astype(dtype),
                   preferred_element_type=jnp.float32) + b3


if __name__ == "__main__":
    # Shapes implied by the module: bag-of-words input -> hidden_size=8 -> classes.
    # batch=20 with block_batch=8 exercises the grid (3 tiles) + last-tile padding.
    batch, input_size, hidden_size, num_classes = 20, 32, 8, 4

    key = jax.random.PRNGKey(0)
    kx, kp = jax.random.split(key)
    x = jax.random.normal(kx, (batch, input_size), jnp.float32)
    raw = init_params(kp, input_size, hidden_size, num_classes)

    padded, dims = prepare_params(*raw)          # pad/cast once, off the hot path

    # force_pallas=True: the demo shape is below the XLA fast-path threshold,
    # but we want the Pallas kernel itself exercised and validated here.
    out = neurons_forward(x, *padded, dims=dims, block_batch=8, force_pallas=True)
    out = jax.block_until_ready(out)

    ref = ref_forward(x, *raw)
    assert out.shape == (batch, num_classes)
    assert jnp.allclose(out, ref, atol=1e-3, rtol=1e-3), (
        f"max abs err = {jnp.max(jnp.abs(out - ref))}")

    print("KERNEL_OK")
</pallas_src>

<mosaic_0001>
module attributes {stable_mosaic.version = 11 : i64} {
  func.func @neurons_kernel(%arg0: i32, %arg1: memref<8x128xbf16, #tpu.memory_space<vmem>>, %arg2: memref<128x128xbf16, #tpu.memory_space<vmem>>, %arg3: memref<1x128xf32, #tpu.memory_space<vmem>>, %arg4: memref<128x128xbf16, #tpu.memory_space<vmem>>, %arg5: memref<1x128xf32, #tpu.memory_space<vmem>>, %arg6: memref<128x128xbf16, #tpu.memory_space<vmem>>, %arg7: memref<1x128xf32, #tpu.memory_space<vmem>>, %arg8: memref<8x128xf32, #tpu.memory_space<vmem>>) attributes {dimension_semantics = [#tpu.dimension_semantics<parallel>], iteration_bounds = array<i64: 3>, scalar_prefetch = 0 : i64, scratch_operands = 0 : i64, tpu.core_type = #tpu.core_type<tc>, window_params = [{transform_indices = @transform_0, window_bounds = array<i64: 8, 128>}, {pipeline_mode = #tpu.pipeline_mode<synchronous>, transform_indices = @transform_1, window_bounds = array<i64: 128, 128>}, {pipeline_mode = #tpu.pipeline_mode<synchronous>, transform_indices = @transform_2, window_bounds = array<i64: 1, 128>}, {pipeline_mode = #tpu.pipeline_mode<synchronous>, transform_indices = @transform_3, window_bounds = array<i64: 128, 128>}, {pipeline_mode = #tpu.pipeline_mode<synchronous>, transform_indices = @transform_4, window_bounds = array<i64: 1, 128>}, {pipeline_mode = #tpu.pipeline_mode<synchronous>, transform_indices = @transform_5, window_bounds = array<i64: 128, 128>}, {pipeline_mode = #tpu.pipeline_mode<synchronous>, transform_indices = @transform_6, window_bounds = array<i64: 1, 128>}, {transform_indices = @transform_7, window_bounds = array<i64: 8, 128>}]} {
    %c0 = arith.constant 0 : index
    %c0_0 = arith.constant 0 : index
    %0 = vector.load %arg1[%c0, %c0_0] : memref<8x128xbf16, #tpu.memory_space<vmem>>, vector<8x128xbf16>
    %c0_1 = arith.constant 0 : index
    %c0_2 = arith.constant 0 : index
    %1 = vector.load %arg2[%c0_1, %c0_2] : memref<128x128xbf16, #tpu.memory_space<vmem>>, vector<128x128xbf16>
    %cst = arith.constant dense<0.000000e+00> : vector<8x128xf32>
    %2 = tpu.matmul %0, %1, %cst {dimension_numbers = #tpu.dot_dimension_numbers<[1], [0], [0], [1], [0, 0, 1, 1], [], []>} : vector<8x128xbf16>, vector<128x128xbf16>, vector<8x128xf32> -> vector<8x128xf32>
    %c0_3 = arith.constant 0 : index
    %c0_4 = arith.constant 0 : index
    %3 = vector.load %arg3[%c0_3, %c0_4] : memref<1x128xf32, #tpu.memory_space<vmem>>, vector<1x128xf32>
    %4 = vector.broadcast %3 : vector<1x128xf32> to vector<8x128xf32>
    %5 = arith.addf %2, %4 : vector<8x128xf32>
    %cst_5 = arith.constant 0.000000e+00 : f32
    %6 = vector.broadcast %cst_5 : f32 to vector<8x128xf32>
    %7 = arith.maximumf %5, %6 : vector<8x128xf32>
    %8 = arith.truncf %7 : vector<8x128xf32> to vector<8x128xbf16>
    %c0_6 = arith.constant 0 : index
    %c0_7 = arith.constant 0 : index
    %9 = vector.load %arg4[%c0_6, %c0_7] : memref<128x128xbf16, #tpu.memory_space<vmem>>, vector<128x128xbf16>
    %cst_8 = arith.constant dense<0.000000e+00> : vector<8x128xf32>
    %10 = tpu.matmul %8, %9, %cst_8 {dimension_numbers = #tpu.dot_dimension_numbers<[1], [0], [0], [1], [0, 0, 1, 1], [], []>} : vector<8x128xbf16>, vector<128x128xbf16>, vector<8x128xf32> -> vector<8x128xf32>
    %c0_9 = arith.constant 0 : index
    %c0_10 = arith.constant 0 : index
    %11 = vector.load %arg5[%c0_9, %c0_10] : memref<1x128xf32, #tpu.memory_space<vmem>>, vector<1x128xf32>
    %12 = vector.broadcast %11 : vector<1x128xf32> to vector<8x128xf32>
    %13 = arith.addf %10, %12 : vector<8x128xf32>
    %cst_11 = arith.constant 0.000000e+00 : f32
    %14 = vector.broadcast %cst_11 : f32 to vector<8x128xf32>
    %15 = arith.maximumf %13, %14 : vector<8x128xf32>
    %16 = arith.truncf %15 : vector<8x128xf32> to vector<8x128xbf16>
    %c0_12 = arith.constant 0 : index
    %c0_13 = arith.constant 0 : index
    %17 = vector.load %arg6[%c0_12, %c0_13] : memref<128x128xbf16, #tpu.memory_space<vmem>>, vector<128x128xbf16>
    %cst_14 = arith.constant dense<0.000000e+00> : vector<8x128xf32>
    %18 = tpu.matmul %16, %17, %cst_14 {dimension_numbers = #tpu.dot_dimension_numbers<[1], [0], [0], [1], [0, 0, 1, 1], [], []>} : vector<8x128xbf16>, vector<128x128xbf16>, vector<8x128xf32> -> vector<8x128xf32>
    %c0_15 = arith.constant 0 : index
    %c0_16 = arith.constant 0 : index
    %19 = vector.load %arg7[%c0_15, %c0_16] : memref<1x128xf32, #tpu.memory_space<vmem>>, vector<1x128xf32>
    %20 = vector.broadcast %19 : vector<1x128xf32> to vector<8x128xf32>
    %21 = arith.addf %18, %20 : vector<8x128xf32>
    %c0_17 = arith.constant 0 : index
    %c0_18 = arith.constant 0 : index
    %22 = vector.load %arg8[%c0_17, %c0_18] : memref<8x128xf32, #tpu.memory_space<vmem>>, vector<8x128xf32>
    tpu.vector_store %arg8[%c0_17, %c0_18], %21 {strides = array<i32>} : memref<8x128xf32, #tpu.memory_space<vmem>>, vector<8x128xf32>,
    return
  }
  func.func @transform_0(%arg0: i32) -> (i32, i32) {
    %c0_i32 = arith.constant 0 : i32
    %c0_i32_0 = arith.constant 0 : i32
    return %arg0, %c0_i32 : i32, i32
  }
  func.func @transform_1(%arg0: i32) -> (i32, i32) {
    %c0_i32 = arith.constant 0 : i32
    %c0_i32_0 = arith.constant 0 : i32
    %c0_i32_1 = arith.constant 0 : i32
    return %c0_i32, %c0_i32_0 : i32, i32
  }
  func.func @transform_2(%arg0: i32) -> (i32, i32) {
    %c0_i32 = arith.constant 0 : i32
    %c0_i32_0 = arith.constant 0 : i32
    %c0_i32_1 = arith.constant 0 : i32
    return %c0_i32, %c0_i32_0 : i32, i32
  }
  func.func @transform_3(%arg0: i32) -> (i32, i32) {
    %c0_i32 = arith.constant 0 : i32
    %c0_i32_0 = arith.constant 0 : i32
    %c0_i32_1 = arith.constant 0 : i32
    return %c0_i32, %c0_i32_0 : i32, i32
  }
  func.func @transform_4(%arg0: i32) -> (i32, i32) {
    %c0_i32 = arith.constant 0 : i32
    %c0_i32_0 = arith.constant 0 : i32
    %c0_i32_1 = arith.constant 0 : i32
    return %c0_i32, %c0_i32_0 : i32, i32
  }
  func.func @transform_5(%arg0: i32) -> (i32, i32) {
    %c0_i32 = arith.constant 0 : i32
    %c0_i32_0 = arith.constant 0 : i32
    %c0_i32_1 = arith.constant 0 : i32
    return %c0_i32, %c0_i32_0 : i32, i32
  }
  func.func @transform_6(%arg0: i32) -> (i32, i32) {
    %c0_i32 = arith.constant 0 : i32
    %c0_i32_0 = arith.constant 0 : i32
    %c0_i32_1 = arith.constant 0 : i32
    return %c0_i32, %c0_i32_0 : i32, i32
  }
  func.func @transform_7(%arg0: i32) -> (i32, i32) {
    %c0_i32 = arith.constant 0 : i32
    %c0_i32_0 = arith.constant 0 : i32
    return %arg0, %c0_i32 : i32, i32
  }
}

</mosaic_0001>

<bundles_post_ra>
// kernel: neurons_forward.1
= control target key start
LH: loop header
LB: loop body
LE: loop exit
PB: predicated region body
PF: predicated region fallthrough
CT: control target
= control target key end

     0   :  { %12 = vsyncpa [#allocation3], 0  ;;  %s1068_s0 = inlined_call_operand.vmem [shape: bf16[24,128], index: 0, kind: input, shape index: {}]   ;;  %s1069_s1 = inlined_call_operand.hbm [shape: bf16[128,128], index: 1, kind: input, shape index: {}]   ;;  %s1070_s2 = inlined_call_operand.vmem [shape: f32[1,128], index: 2, kind: input, shape index: {}]   ;;  %s1071_s3 = inlined_call_operand.hbm [shape: bf16[128,128], index: 3, kind: input, shape index: {}]   ;;  %s1072_s4 = inlined_call_operand.hbm [shape: f32[1,128], index: 4, kind: input, shape index: {}]   ;;  %s1073_s5 = inlined_call_operand.vmem [shape: bf16[128,128], index: 5, kind: input, shape index: {}]   ;;  %s1074_s6 = inlined_call_operand.vmem [shape: f32[1,128], index: 6, kind: input, shape index: {}]   ;;  %s1075_s7 = inlined_call_operand.vmem [shape: f32[24,128], index: 7, kind: output, shape index: {}]  }
   0x1   :  { %13 = vsyncpa [#allocation5], 0  ;;  %s985_s24 = smov 0  }
   0x2 LB: > { %s991_s25 = sadd.s32 4294967295, %s938_s24   ;;  %p657_p0 = scmp.ge.s32.totalorder %s938_s24, 1  ;;  %s938_s24 = sphi %s985_s24, %s19_s24  }
   0x3   : > { %p202_p1 = scmp.lt.s32.totalorder %s938_s24, 4  ;;  %p812_p2 = scmp.eq.s32.totalorder %s991_s25, 0 }
   0x4   : > { %s230_s28 = sshll.u32 %s1071_s3, 4  ;;  %s213_s9 = sshll.u32 %s1069_s1, 4  ;;  %s231_s28 = int_to_ptr.hbm [resolvable:$true] %s230_s28  ;;  %s214_s9 = int_to_ptr.hbm [resolvable:$true] %s213_s9 }
   0x5   : > { %p999_p3 = pnand %p657_p0, %p202_p1  ;;  %s940_s10 = smov [#allocation4]  }
   0x6   : > { %s232_s11 = sshll.u32 %s940_s10, 4  ;;  %s941_s12 = smov [#allocation2]   ;;  %s233_s11 = int_to_ptr.vmem [resolvable:$true] %s232_s11 }
   0x7   : > { %p802_p4 = pneg %p999_p3  ;;  %s215_s13 = sshll.u32 %s941_s12, 4  ;;  %s216_s13 = int_to_ptr.vmem [resolvable:$true] %s215_s13 }
   0x8   : > { %s245_s16 = sshll.u32 %s1072_s4, 4  ;;  %s942_s17 = smov 64   ;;  %s246_s16 = int_to_ptr.hbm [resolvable:$true] %s245_s16 }
   0x9   : > { %p803_p5 = pnand %p812_p2, %p802_p4  ;;  %s943_s18 = smov 4  }
   0xa   : > { %s944_s19 = smov [#allocation6]   ;;  %273 = sbr.rel (%p999_p3) target bundleno = 454 (0x1c6), region = 48 }
   0xb   : > { %808 = dma.hbm_to_vmem [thread:$0]  (!%p803_p5), %s231_s28, 1024, %s233_s11, [#allocation5], %s942_s17, %s942_s17, %s943_s18  }
   0xc   : > { %805 = dma.hbm_to_vmem [thread:$0]  (!%p803_p5), %s214_s9, 1024, %s216_s13, [#allocation3], %s942_s17, %s942_s17, %s943_s18  }
   0xd   : > { %s247_s20 = sshll.u32 %s944_s19, 4  ;;  %s248_s20 = int_to_ptr.vmem [resolvable:$true] %s247_s20 }
   0xe   : > { %811 = dma.hbm_to_vmem [thread:$0]  (!%p803_p5), %s246_s16, 16, %s248_s20, [#allocation5]  }
   0xf   : > { %929 = dma.done.wait (%p812_p2), [#allocation3], 1024  }
  0x10   : > { %931 = vsyncadd (%p812_p2), [#allocation3], 4294966272 }
  0x11   : > { %933 = dma.done.wait (%p812_p2), [#allocation5], 1040  }
  0x12   : > { %935 = vsyncadd (%p812_p2), [#allocation5], 4294966256  ;;  %v773_v0 = vld [vmem:[#allocation2 + $0x38] sm:$0xff]  ;;  %v772_v1 = vld [vmem:[#allocation2 + $0x30] sm:$0xff]  ;;  %p314_p6 = scmp.lt.s32.totalorder %s991_s25, 2 }
  0x13   : > { %391 = vmatpush.bf16.msra.mxu0 %v773_v0  ;;  %v781_v2 = vld [vmem:[#allocation4 + $0x38] sm:$0xff]  ;;  %v780_v3 = vld [vmem:[#allocation4 + $0x30] sm:$0xff]  ;;  %v771_v4 = vld [vmem:[#allocation2 + $0x28] sm:$0xff] }
  0x14   : > { %474 = vmatpush.bf16.msra.mxu1 %v781_v2  ;;  %v779_v5 = vld [vmem:[#allocation4 + $0x28] sm:$0xff]  ;;  %v770_v6 = vld [vmem:[#allocation2 + $0x20] sm:$0xff]  ;;  %v769_v8 = vld [vmem:[#allocation2 + $0x18] sm:$0xff]  ;;  %s1078_s25 = smov (!%p314_p6, %s991_s25), 2 }
  0x15   : > { %v778_v7 = vld [vmem:[#allocation4 + $0x20] sm:$0xff]  ;;  %v777_v9 = vld [vmem:[#allocation4 + $0x18] sm:$0xff]  ;;  %v768_v10 = vld [vmem:[#allocation2 + $0x10] sm:$0xff]  ;;  %s666_s21 = sshll.u32 %s1078_s25, 2  ;;  %s667_s22 = sshll.u32 %s1078_s25, 3 }
  0x16   : > { %v776_v11 = vld [vmem:[#allocation4 + $0x10] sm:$0xff]  ;;  %v767_v12 = vld [vmem:[#allocation2 + $0x8] sm:$0xff]  ;;  %v766_v13 = vld [vmem:[#allocation2] sm:$0xff]  ;;  %s317_s26 = scalar_lea.vmem %s1068_s0, %s666_s21  ;;  %s321_s29 = scalar_lea.vmem %s1075_s7, %s667_s22 }
  0x17   : > { %392 = vmatpush.bf16.msra.mxu0 %v772_v1  ;;  %v322_v14 = vld [vmem:[%s317_s26] sm:$0xf]  ;;  %v775_v15 = vld [vmem:[#allocation4 + $0x8] sm:$0xff]  ;;  %v789_v17 = vld [vmem:[%s1073_s5 + $0x38] sm:$0xff] }
  0x18   : > { %475 = vmatpush.bf16.msra.mxu1 %v780_v3  ;;  %v774_v16 = vld [vmem:[#allocation4] sm:$0xff]  ;;  %557 = vmatpush.bf16.msra.mxu2 %v789_v17  ;;  %v788_v18 = vld [vmem:[%s1073_s5 + $0x30] sm:$0xff]  ;;  %v787_v19 = vld [vmem:[%s1073_s5 + $0x28] sm:$0xff] }
  0x19   : > { %v786_v20 = vld [vmem:[%s1073_s5 + $0x20] sm:$0xff]  ;;  %v785_v21 = vld [vmem:[%s1073_s5 + $0x18] sm:$0xff]  ;;  %v784_v22 = vld [vmem:[%s1073_s5 + $0x10] sm:$0xff] }
  0x1a   : > { %v831_v23 = vld [vmem:[%s1070_s2] ss:$0 sm:$0xff]  ;;  %v783_v29 = vld [vmem:[%s1073_s5 + $0x8] sm:$0xff] }
  0x1b   : > { %393 = vmatpush.bf16.msra.mxu0 %v771_v4  ;;  %v782_v30 = vld [vmem:[%s1073_s5] sm:$0xff] }
  0x1c   : > { %476 = vmatpush.bf16.msra.mxu1 %v779_v5  ;;  %558 = vmatpush.bf16.msra.mxu2 %v788_v18  ;;  %v832_v31 = vld [vmem:[#allocation6] ss:$0 sm:$0xff] }
  0x1d   : > { %v833_v37 = vld [vmem:[%s1074_s6] ss:$0 sm:$0xff] }
  0x1f   : > { %394 = vmatpush.bf16.msra.mxu0 %v770_v6 }
  0x20   : > { %477 = vmatpush.bf16.msra.mxu1 %v778_v7  ;;  %559 = vmatpush.bf16.msra.mxu2 %v787_v19 }
  0x23   : > { %395 = vmatpush.bf16.msra.mxu0 %v769_v8 }
  0x24   : > { %478 = vmatpush.bf16.msra.mxu1 %v777_v9  ;;  %560 = vmatpush.bf16.msra.mxu2 %v786_v20 }
  0x27   : > { %396 = vmatpush.bf16.msra.mxu0 %v768_v10 }
  0x28   : > { %479 = vmatpush.bf16.msra.mxu1 %v776_v11  ;;  %561 = vmatpush.bf16.msra.mxu2 %v785_v21 }
  0x2b   : > { %397 = vmatpush.bf16.msra.mxu0 %v767_v12 }
  0x2c   : > { %480 = vmatpush.bf16.msra.mxu1 %v775_v15  ;;  %562 = vmatpush.bf16.msra.mxu2 %v784_v22 }
  0x2f   : > { %398 = vmatpush.bf16.msra.mxu0 %v766_v13 }
  0x30   : > { %481 = vmatpush.bf16.msra.mxu1 %v774_v16  ;;  %563 = vmatpush.bf16.msra.mxu2 %v783_v29 }
  0x32   : > { %399 = vmatmul.bf16.vlgmr.msra.gmra.mxu0 %v322_v14 }
  0x34   : > { %564 = vmatpush.bf16.msra.mxu2 %v782_v30 }
  0xaf   : > { %v400_v24 = vpop.f32.mrf.mxu0 }
  0xb0   : > { %v401_v25 = vadd.f32 %v831_v23, %v400_v24 }
  0xb2   : > { %v404_v26 = vmax.f32 %v401_v25, 0.0 }
  0xb4   : > { %v405_v27 = vpack.c.bf16 %v404_v26, %v404_v26 }
  0xb6   : > { %482 = vmatmul.bf16.vlgmr.msra.gmra.mxu1 %v405_v27 }
  0xb7   : > { %v402_v28 = vpop.f32.mrf.mxu0 }
 0x133   : > { %v483_v32 = vpop.f32.mrf.mxu1 }
 0x134   : > { %v484_v33 = vadd.f32 %v832_v31, %v483_v32 }
 0x136   : > { %v487_v34 = vmax.f32 %v484_v33, 0.0 }
 0x138   : > { %v488_v35 = vpack.c.bf16 %v487_v34, %v487_v34 }
 0x13a   : > { %565 = vmatmul.bf16.vlgmr.msra.gmra.mxu2 %v488_v35 }
 0x13b   : > { %v485_v36 = vpop.f32.mrf.mxu1 }
 0x1bd   : > { %v566_v38 = vpop.f32.mrf.mxu2 }
 0x1be   : > { %v567_v39 = vadd.f32 %v833_v37, %v566_v38 }
 0x1c0   : > { %570 = vst [vmem:[%s321_s29] sm:$0xff] %v567_v39 }
 0x1c5   : > { %v568_v40 = vpop.f32.mrf.mxu2 }
 0x1c6 PF: > { %s19_s24 = sadd.s32 1, %s938_s24  }
 0x1c7   : > { %p16_p7 = scmp.ge.s32.totalorder %s19_s24, 5  }
 0x1c9   :  { %18 = sbr.rel (!%p16_p7) target bundleno = 2 (0x2), region = 91 }
 0x1ce   :  { %590 = vsyncpa [#allocation3], 1 }
 0x1cf   :  { %592 = vsyncpa [#allocation3 + $0x1], 1 }
 0x1d0   :  { %593 = vsyncpa [#allocation5], 1 }

</bundles_post_ra>
